<compile_context>
chip_gen: v5e
topology: v5e:2x2
jax: 0.10.0
libtpu: 0.0.40
codegen_flags: <defaults>
</compile_context>

<pallas_src>
import math

import jax
import jax.numpy as jnp
from jax.experimental import pallas as pl
from jax.experimental.pallas import tpu as pltpu

# Pendulum-v1 constants (env not imported; fixed by the environment spec).
STATE_DIM = 3           # observation: cos(theta), sin(theta), theta_dot
ACTION_DIM = 1          # single torque action
ACTION_MAX = 2.0        # action_space.high[0] == 2.0, low == -2.0
HIDDEN_DIM = 64         # xonfig.hidden_dim

HP = 128                # hidden width zero-padded to native lane width
K1 = 8                  # padded input rows (3 features + ones-row + 4 zeros)
LANES = 128
ONES_ROW = STATE_DIM    # row of x^T that carries the constant 1 (bias feed)
UNIT_ROW = HP - 1       # padded hidden unit hijacked to carry a constant 1


def _round_up(x, m):
    return (x + m - 1) // m * m


def _choose_tiles(B, batch_tile):
    """Batch tile: multiple of 128; >=2 parallel grid steps when batch allows (v7x)."""
    TB = _round_up(min(batch_tile, B), LANES)
    Bp = _round_up(B, TB)
    if Bp // TB < 2 and B > LANES:
        TB = _round_up((B + 1) // 2, LANES)
        Bp = _round_up(B, TB)
    return TB, Bp


def actor_kernel(xT_ref, w1_ref, w2_ref, w3_ref, out_ref):
    # Layer 1: (HP, 8) @ (8, TB) on the MXU; b1 folded in via the ones-row of x^T.
    h1 = jnp.dot(w1_ref[...], xT_ref[...], preferred_element_type=jnp.float32)
    h1 = jnp.maximum(h1, 0.0).astype(w2_ref.dtype)              # (HP, TB)

    # Layer 2: native (128,128) @ (128,TB) MXU tile; b2 folded in via UNIT_ROW.
    h2 = jnp.dot(w2_ref[...], h1, preferred_element_type=jnp.float32)
    h2 = jnp.maximum(h2, 0.0).astype(w3_ref.dtype)              # (HP, TB)

    # Layer 3: (8,128) @ (128,TB); row 0 holds w3 (+ b3 in UNIT_ROW column).
    y8 = jnp.dot(w3_ref[...], h2, preferred_element_type=jnp.float32)   # (8, TB)

    # ModTanh and batch-packed (1, TB) lane-dense store: 4 B/row of writeback.
    out_ref[...] = (jnp.tanh(y8[0:1, :]) * ACTION_MAX).astype(out_ref.dtype)


def pack_actor_params(params, hidden_dim=HIDDEN_DIM, mxu_dtype=jnp.float32):
    """Pack/pad weights for the transposed kernel; biases ride the matmuls.

    Incoming weights are stored (in_features, out_features) (transposed vs
    PyTorch's nn.Linear (out, in)).  Zero padding of hidden units is sound:
    padded units stay exactly 0 through ReLU — except UNIT_ROW, which is wired
    to carry a constant 1 so the biases can be folded into the matmuls.
    """
    w1, b1, w2, b2, w3, b3 = params
    assert hidden_dim < HP, "need at least one spare padded hidden unit"
    b1 = b1.reshape(-1)
    b2 = b2.reshape(-1)
    w3 = w3.reshape(-1)
    b3 = jnp.asarray(b3).reshape(-1)[0]

    # Layer 1: (HP, K1). cols 0..2 = W1^T, col ONES_ROW = b1; UNIT_ROW -> 1.
    w1a = jnp.zeros((HP, K1), jnp.float32)
    w1a = w1a.at[:hidden_dim, :STATE_DIM].set(w1.T)
    w1a = w1a.at[:hidden_dim, ONES_ROW].set(b1)
    w1a = w1a.at[UNIT_ROW, ONES_ROW].set(1.0)          # h1[UNIT_ROW] == 1

    # Layer 2: (HP, HP). W2^T plus b2 in column UNIT_ROW; UNIT_ROW passes the 1.
    w2a = jnp.zeros((HP, HP), jnp.float32)
    w2a = w2a.at[:hidden_dim, :hidden_dim].set(w2.T)
    w2a = w2a.at[:hidden_dim, UNIT_ROW].set(b2)
    w2a = w2a.at[UNIT_ROW, UNIT_ROW].set(1.0)           # h2[UNIT_ROW] == 1

    # Layer 3: (8, HP). row 0 = w3 (+ b3 in column UNIT_ROW); rows 1..7 zero.
    w3a = jnp.zeros((8, HP), jnp.float32)
    w3a = w3a.at[0, :hidden_dim].set(w3)
    w3a = w3a.at[0, UNIT_ROW].set(b3)

    return (w1a.astype(mxu_dtype), w2a.astype(mxu_dtype), w3a.astype(mxu_dtype))


def actor_forward(state, packed_params, *, batch_tile=1024):
    """state: (B, STATE_DIM) float32 -> (B, ACTION_DIM) float32."""
    w1a, w2a, w3a = packed_params
    B = state.shape[0]
    TB, Bp = _choose_tiles(B, batch_tile)

    # Transposed, padded input: rows 0..2 = state^T, row 3 = 1 (bias feed).
    xT = jnp.zeros((K1, Bp), jnp.float32)
    xT = xT.at[:STATE_DIM, :B].set(state.T)
    xT = xT.at[ONES_ROW, :].set(1.0)
    xT = xT.astype(w1a.dtype)

    const = lambda arr: pl.BlockSpec(arr.shape, lambda i: (0, 0))  # VMEM-resident

    out = pl.pallas_call(
        actor_kernel,
        out_shape=jax.ShapeDtypeStruct((1, Bp), jnp.float32),
        grid=(Bp // TB,),
        in_specs=[
            pl.BlockSpec((K1, TB), lambda i: (0, i)),   # batch-tiled input
            const(w1a),
            const(w2a),
            const(w3a),
        ],
        out_specs=pl.BlockSpec((1, TB), lambda i: (0, i)),   # batch-packed output
        compiler_params=pltpu.CompilerParams(
            dimension_semantics=("parallel",)),
    )(xT, w1a, w2a, w3a)

    return out[0, :B].reshape(B, ACTION_DIM)


def init_actor_params(key, state_dim=STATE_DIM, action_dim=ACTION_DIM, hidden_dim=HIDDEN_DIM):
    """nn.Linear default init U(-1/sqrt(fan_in), 1/sqrt(fan_in)); weights stored (in, out)."""
    keys = jax.random.split(key, 6)

    def linear(kw, kb, fan_in, fan_out):
        bound = 1.0 / math.sqrt(fan_in)
        w = jax.random.uniform(kw, (fan_in, fan_out), jnp.float32, -bound, bound)
        b = jax.random.uniform(kb, (1, fan_out), jnp.float32, -bound, bound)
        return w, b

    w1, b1 = linear(keys[0], keys[1], state_dim, hidden_dim)
    w2, b2 = linear(keys[2], keys[3], hidden_dim, hidden_dim)
    w3, b3 = linear(keys[4], keys[5], hidden_dim, action_dim)
    return (w1, b1, w2, b2, w3, b3)


def actor_reference(state, params):
    """Pure-JAX reference for correctness checking."""
    w1, b1, w2, b2, w3, b3 = params
    h1 = jnp.maximum(state @ w1 + b1, 0.0)
    h2 = jnp.maximum(h1 @ w2 + b2, 0.0)
    return jnp.tanh(h2 @ w3 + b3) * ACTION_MAX


if __name__ == "__main__":
    key = jax.random.PRNGKey(0)
    k_params, k_state, k_state2 = jax.random.split(key, 3)

    params = init_actor_params(k_params)

    # --- f32 path (exact module semantics), module batch size (64), single tile.
    packed = pack_actor_params(params)
    batch = 64  # xonfig.batch_size
    state = jax.random.normal(k_state, (batch, STATE_DIM), dtype=jnp.float32)
    out = jax.block_until_ready(actor_forward(state, packed))
    ref = actor_reference(state, params)
    assert out.shape == (batch, ACTION_DIM)
    assert jnp.allclose(out, ref, atol=1e-4, rtol=1e-4), "mismatch vs reference (B=64)"
    assert float(jnp.max(jnp.abs(out))) <= ACTION_MAX + 1e-4

    # --- multi-tile parallel grid path (non-multiple batch).
    batch2 = 200
    state2 = jax.random.normal(k_state2, (batch2, STATE_DIM), dtype=jnp.float32)
    out2 = jax.block_until_ready(actor_forward(state2, packed, batch_tile=128))
    ref2 = actor_reference(state2, params)
    assert out2.shape == (batch2, ACTION_DIM)
    assert jnp.allclose(out2, ref2, atol=1e-4, rtol=1e-4), "mismatch vs reference (B=200)"

    # --- bf16 MXU operands (f32 accumulation): ~3x fewer MXU passes; looser tolerance.
    packed_bf16 = pack_actor_params(params, mxu_dtype=jnp.bfloat16)
    out3 = jax.block_until_ready(actor_forward(state2, packed_bf16, batch_tile=128))
    assert out3.shape == (batch2, ACTION_DIM)
    assert jnp.allclose(out3, ref2, atol=5e-2, rtol=5e-2), "mismatch vs reference (bf16)"

    print("KERNEL_OK")
</pallas_src>

<mosaic_0001>
module attributes {stable_mosaic.version = 11 : i64} {
  func.func @actor_kernel(%arg0: i32, %arg1: memref<8x128xf32, #tpu.memory_space<vmem>>, %arg2: memref<128x8xf32, #tpu.memory_space<vmem>>, %arg3: memref<128x128xf32, #tpu.memory_space<vmem>>, %arg4: memref<8x128xf32, #tpu.memory_space<vmem>>, %arg5: memref<1x128xf32, #tpu.memory_space<vmem>>) attributes {dimension_semantics = [#tpu.dimension_semantics<parallel>], iteration_bounds = array<i64: 1>, scalar_prefetch = 0 : i64, scratch_operands = 0 : i64, tpu.core_type = #tpu.core_type<tc>, window_params = [{transform_indices = @transform_0, window_bounds = array<i64: 8, 128>}, {pipeline_mode = #tpu.pipeline_mode<synchronous>, transform_indices = @transform_1, window_bounds = array<i64: 128, 8>}, {pipeline_mode = #tpu.pipeline_mode<synchronous>, transform_indices = @transform_2, window_bounds = array<i64: 128, 128>}, {pipeline_mode = #tpu.pipeline_mode<synchronous>, transform_indices = @transform_3, window_bounds = array<i64: 8, 128>}, {transform_indices = @transform_4, window_bounds = array<i64: 1, 128>}]} {
    %c0 = arith.constant 0 : index
    %c0_0 = arith.constant 0 : index
    %0 = vector.load %arg2[%c0, %c0_0] : memref<128x8xf32, #tpu.memory_space<vmem>>, vector<128x8xf32>
    %c0_1 = arith.constant 0 : index
    %c0_2 = arith.constant 0 : index
    %1 = vector.load %arg1[%c0_1, %c0_2] : memref<8x128xf32, #tpu.memory_space<vmem>>, vector<8x128xf32>
    %cst = arith.constant dense<0.000000e+00> : vector<128x128xf32>
    %2 = tpu.matmul %0, %1, %cst {dimension_numbers = #tpu.dot_dimension_numbers<[1], [0], [0], [1], [0, 0, 1, 1], [], []>} : vector<128x8xf32>, vector<8x128xf32>, vector<128x128xf32> -> vector<128x128xf32>
    %cst_3 = arith.constant 0.000000e+00 : f32
    %3 = vector.broadcast %cst_3 : f32 to vector<128x128xf32>
    %4 = arith.maximumf %2, %3 : vector<128x128xf32>
    %c0_4 = arith.constant 0 : index
    %c0_5 = arith.constant 0 : index
    %5 = vector.load %arg3[%c0_4, %c0_5] : memref<128x128xf32, #tpu.memory_space<vmem>>, vector<128x128xf32>
    %cst_6 = arith.constant dense<0.000000e+00> : vector<128x128xf32>
    %6 = tpu.matmul %5, %4, %cst_6 {dimension_numbers = #tpu.dot_dimension_numbers<[1], [0], [0], [1], [0, 0, 1, 1], [], []>} : vector<128x128xf32>, vector<128x128xf32>, vector<128x128xf32> -> vector<128x128xf32>
    %cst_7 = arith.constant 0.000000e+00 : f32
    %7 = vector.broadcast %cst_7 : f32 to vector<128x128xf32>
    %8 = arith.maximumf %6, %7 : vector<128x128xf32>
    %c0_8 = arith.constant 0 : index
    %c0_9 = arith.constant 0 : index
    %9 = vector.load %arg4[%c0_8, %c0_9] : memref<8x128xf32, #tpu.memory_space<vmem>>, vector<8x128xf32>
    %cst_10 = arith.constant dense<0.000000e+00> : vector<8x128xf32>
    %10 = tpu.matmul %9, %8, %cst_10 {dimension_numbers = #tpu.dot_dimension_numbers<[1], [0], [0], [1], [0, 0, 1, 1], [], []>} : vector<8x128xf32>, vector<128x128xf32>, vector<8x128xf32> -> vector<8x128xf32>
    %11 = vector.extract_strided_slice %10 {offsets = [0, 0], sizes = [1, 128], strides = [1, 1]} : vector<8x128xf32> to vector<1x128xf32>
    %12 = math.tanh %11 : vector<1x128xf32>
    %cst_11 = arith.constant 2.000000e+00 : f32
    %13 = vector.broadcast %cst_11 : f32 to vector<1x128xf32>
    %14 = arith.mulf %12, %13 : vector<1x128xf32>
    %c0_12 = arith.constant 0 : index
    %c0_13 = arith.constant 0 : index
    %15 = vector.load %arg5[%c0_12, %c0_13] : memref<1x128xf32, #tpu.memory_space<vmem>>, vector<1x128xf32>
    tpu.vector_store %arg5[%c0_12, %c0_13], %14 {strides = array<i32>} : memref<1x128xf32, #tpu.memory_space<vmem>>, vector<1x128xf32>,
    return
  }
  func.func @transform_0(%arg0: i32) -> (i32, i32) {
    %c0_i32 = arith.constant 0 : i32
    %c0_i32_0 = arith.constant 0 : i32
    return %c0_i32, %arg0 : i32, i32
  }
  func.func @transform_1(%arg0: i32) -> (i32, i32) {
    %c0_i32 = arith.constant 0 : i32
    %c0_i32_0 = arith.constant 0 : i32
    %c0_i32_1 = arith.constant 0 : i32
    return %c0_i32, %c0_i32_0 : i32, i32
  }
  func.func @transform_2(%arg0: i32) -> (i32, i32) {
    %c0_i32 = arith.constant 0 : i32
    %c0_i32_0 = arith.constant 0 : i32
    %c0_i32_1 = arith.constant 0 : i32
    return %c0_i32, %c0_i32_0 : i32, i32
  }
  func.func @transform_3(%arg0: i32) -> (i32, i32) {
    %c0_i32 = arith.constant 0 : i32
    %c0_i32_0 = arith.constant 0 : i32
    %c0_i32_1 = arith.constant 0 : i32
    return %c0_i32, %c0_i32_0 : i32, i32
  }
  func.func @transform_4(%arg0: i32) -> (i32, i32) {
    %c0_i32 = arith.constant 0 : i32
    %c0_i32_0 = arith.constant 0 : i32
    return %c0_i32, %arg0 : i32, i32
  }
}

</mosaic_0001>

<bundles_post_ra>
// kernel: tpu_custom_call.1
= control target key start
LH: loop header
LB: loop body
LE: loop exit
PB: predicated region body
PF: predicated region fallthrough
CT: control target
= control target key end

     0   :  { %9 = vsyncpa [#allocation3], 0  ;;  %s557_s0 = inlined_call_operand.vmem [shape: f32[8,128], index: 0, kind: input, shape index: {}]   ;;  %s558_s1 = inlined_call_operand.vmem [shape: f32[128,8], index: 1, kind: input, shape index: {}]   ;;  %s559_s2 = inlined_call_operand.vmem [shape: f32[128,128], index: 2, kind: input, shape index: {}]   ;;  %s560_s3 = inlined_call_operand.hbm [shape: f32[8,128], index: 3, kind: input, shape index: {}]   ;;  %s561_s4 = inlined_call_operand.hbm [shape: f32[1,128], index: 4, kind: output, shape index: {}]  }
   0x1   :  { %10 = vsyncpa [#allocation4], 0  ;;  %s22_s17 = sshll.u32 %s560_s3, 4  ;;  %s406_s18 = smov [#allocation2]   ;;  %s23_s17 = int_to_ptr.hbm [resolvable:$true] %s22_s17 }
   0x2   :  { %s24_s19 = sshll.u32 %s406_s18, 4  ;;  %s25_s19 = int_to_ptr.vmem [resolvable:$true] %s24_s19 }
   0x3   :  { %27 = dma.hbm_to_vmem [thread:$0]  %s23_s17, 128, %s25_s19, [#allocation3]  }
   0x4   :  { %402 = dma.done.wait [#allocation3], 128  }
   0x5   :  { %403 = vsyncadd [#allocation3], 4294967168  ;;  %vm49_vm0 = vcmask 64512   ;;  %v48_v0 = vld [vmem:[%s557_s0] sm:$0xff]  ;;  %v43_v2 = vld [vmem:[%s558_s1 + $0x58] sm:$0xff]  ;;  %s307_s29 = sshll.u32 %s561_s4, 4  ;;  %s308_s29 = int_to_ptr.hbm [resolvable:$true] %s307_s29 }
   0x6   :  { %v32_v1 = vld [vmem:[%s558_s1] sm:$0xff]  ;;  %113 = vmatpush.msra.mxu0 %v48_v0  ;;  %333 = vmatpush.msra.mxu2 %v48_v0  ;;  %v33_v3 = vld [vmem:[%s558_s1 + $0x8] sm:$0xff]  ;;  %v34_v5 = vld [vmem:[%s558_s1 + $0x10] sm:$0xff] }
   0x7   :  { %317 = vmatmul.msk.f32.vlgmr.msra.gmra.mxu0 %vm49_vm0, %v32_v1  ;;  %328 = vmatmul.msk.f32.vlgmr.msra.gmra.mxu2 %vm49_vm0, %v43_v2  ;;  %v44_v4 = vld [vmem:[%s558_s1 + $0x60] sm:$0xff]  ;;  %v45_v6 = vld [vmem:[%s558_s1 + $0x68] sm:$0xff]  ;;  %v35_v7 = vld [vmem:[%s558_s1 + $0x18] sm:$0xff] }
   0x8   :  { %v46_v8 = vld [vmem:[%s558_s1 + $0x70] sm:$0xff]  ;;  %v36_v9 = vld [vmem:[%s558_s1 + $0x20] sm:$0xff]  ;;  %v47_v10 = vld [vmem:[%s558_s1 + $0x78] sm:$0xff] }
   0x9   :  { %v37_v11 = vld [vmem:[%s558_s1 + $0x28] sm:$0xff]  ;;  %v38_v12 = vld [vmem:[%s558_s1 + $0x30] sm:$0xff]  ;;  %v39_v13 = vld [vmem:[%s558_s1 + $0x38] sm:$0xff] }
   0xa   :  { %v40_v14 = vld [vmem:[%s558_s1 + $0x40] sm:$0xff]  ;;  %v41_v15 = vld [vmem:[%s558_s1 + $0x48] sm:$0xff]  ;;  %v42_v16 = vld [vmem:[%s558_s1 + $0x50] sm:$0xff] }
   0xb   :  { %v187_v49 = vld [vmem:[%s559_s2 + $0x40] sm:$0xff]  ;;  %v188_v51 = vld [vmem:[%s559_s2 + $0x48] sm:$0xff]  ;;  %v189_v53 = vld [vmem:[%s559_s2 + $0x50] sm:$0xff] }
   0xc   :  { %v179_v50 = vld [vmem:[%s559_s2] sm:$0xff]  ;;  %v180_v52 = vld [vmem:[%s559_s2 + $0x8] sm:$0xff]  ;;  %v181_v54 = vld [vmem:[%s559_s2 + $0x10] sm:$0xff] }
   0xd   :  { %v190_v55 = vld [vmem:[%s559_s2 + $0x58] sm:$0xff]  ;;  %v191_v57 = vld [vmem:[%s559_s2 + $0x60] sm:$0xff]  ;;  %v192_v59 = vld [vmem:[%s559_s2 + $0x68] sm:$0xff] }
   0xe   :  { %v182_v56 = vld [vmem:[%s559_s2 + $0x18] sm:$0xff]  ;;  %v183_v58 = vld [vmem:[%s559_s2 + $0x20] sm:$0xff]  ;;  %v184_v60 = vld [vmem:[%s559_s2 + $0x28] sm:$0xff] }
   0xf   :  { %318 = vmatmul.msk.f32.gmra.mxu0 %vm49_vm0, %v33_v3  ;;  %329 = vmatmul.msk.f32.gmra.mxu2 %vm49_vm0, %v44_v4  ;;  %v193_v61 = vld [vmem:[%s559_s2 + $0x70] sm:$0xff]  ;;  %v194_v63 = vld [vmem:[%s559_s2 + $0x78] sm:$0xff] }
  0x10   :  { %v185_v62 = vld [vmem:[%s559_s2 + $0x30] sm:$0xff]  ;;  %v186_v0 = vld [vmem:[%s559_s2 + $0x38] sm:$0xff]  ;;  %s407_s2 = smov [#allocation5]  }
  0x11   :  { %s305_s27 = sshll.u32 %s407_s2, 4  ;;  %s306_s27 = int_to_ptr.vmem [resolvable:$true] %s305_s27 }
  0x17   :  { %319 = vmatmul.msk.f32.gmra.mxu0 %vm49_vm0, %v34_v5  ;;  %330 = vmatmul.msk.f32.gmra.mxu2 %vm49_vm0, %v45_v6 }
  0x1f   :  { %320 = vmatmul.msk.f32.gmra.mxu0 %vm49_vm0, %v35_v7  ;;  %331 = vmatmul.msk.f32.gmra.mxu2 %vm49_vm0, %v46_v8 }
  0x27   :  { %321 = vmatmul.msk.f32.gmra.mxu0 %vm49_vm0, %v36_v9  ;;  %332 = vmatmul.msk.f32.gmra.mxu2 %vm49_vm0, %v47_v10 }
  0x2f   :  { %322 = vmatmul.msk.f32.gmra.mxu0 %vm49_vm0, %v37_v11 }
  0x37   :  { %323 = vmatmul.msk.f32.gmra.mxu0 %vm49_vm0, %v38_v12 }
  0x3f   :  { %324 = vmatmul.msk.f32.gmra.mxu0 %vm49_vm0, %v39_v13 }
  0x47   :  { %325 = vmatmul.msk.f32.gmra.mxu0 %vm49_vm0, %v40_v14 }
  0x4f   :  { %326 = vmatmul.msk.f32.gmra.mxu0 %vm49_vm0, %v41_v15 }
  0x57   :  { %327 = vmatmul.msk.f32.gmra.mxu0 %vm49_vm0, %v42_v16 }
  0x84   :  { %v503_v17 = vpop.f32.mrf.mxu0 }
  0x85   :  { %v163_v48 = vmax.f32 %v503_v17, 0.0 }
  0x8a   :  { %v148_v18 = vpop.f32.mrf.mxu2 }
  0x8b   :  { %v174_v32 = vmax.f32 %v148_v18, 0.0 }
  0x8c   :  { %v118_v19 = vpop.f32.mrf.mxu0 }
  0x8d   :  { %v164_v47 = vmax.f32 %v118_v19, 0.0 }
  0x92   :  { %v151_v20 = vpop.f32.mrf.mxu2 }
  0x93   :  { %v175_v31 = vmax.f32 %v151_v20, 0.0 }
  0x94   :  { %v121_v21 = vpop.f32.mrf.mxu0 }
  0x95   :  { %v165_v46 = vmax.f32 %v121_v21, 0.0 }
  0x9a   :  { %v154_v22 = vpop.f32.mrf.mxu2 }
  0x9b   :  { %v176_v30 = vmax.f32 %v154_v22, 0.0 }
  0x9c   :  { %v124_v23 = vpop.f32.mrf.mxu0 }
  0x9d   :  { %v166_v45 = vmax.f32 %v124_v23, 0.0 }
  0xa2   :  { %v157_v24 = vpop.f32.mrf.mxu2 }
  0xa3   :  { %v177_v27 = vmax.f32 %v157_v24, 0.0 }
  0xa4   :  { %v127_v25 = vpop.f32.mrf.mxu0 }
  0xa5   :  { %v167_v44 = vmax.f32 %v127_v25, 0.0 }
  0xaa   :  { %v160_v26 = vpop.f32.mrf.mxu2 }
  0xab   :  { %v178_v28 = vmax.f32 %v160_v26, 0.0 }
  0xac   :  { %v130_v29 = vpop.f32.mrf.mxu0 }
  0xad   :  { %195 = vmatpush.msra.mxu1 %v178_v28  ;;  %334 = vmatpush.msra.mxu3 %v178_v28  ;;  %v168_v43 = vmax.f32 %v130_v29, 0.0 }
  0xaf   :  { %196 = vmatpush.msra.mxu1 %v177_v27  ;;  %335 = vmatpush.msra.mxu3 %v177_v27 }
  0xb1   :  { %197 = vmatpush.msra.mxu1 %v176_v30  ;;  %336 = vmatpush.msra.mxu3 %v176_v30 }
  0xb3   :  { %198 = vmatpush.msra.mxu1 %v175_v31  ;;  %337 = vmatpush.msra.mxu3 %v175_v31 }
  0xb4   :  { %v133_v33 = vpop.f32.mrf.mxu0 }
  0xb5   :  { %199 = vmatpush.msra.mxu1 %v174_v32  ;;  %338 = vmatpush.msra.mxu3 %v174_v32  ;;  %v169_v42 = vmax.f32 %v133_v33, 0.0  ;;  %v276_v33 = vld [vmem:[#allocation2] sm:$0xff] }
  0xbc   :  { %v136_v34 = vpop.f32.mrf.mxu0 }
  0xbd   :  { %v170_v41 = vmax.f32 %v136_v34, 0.0 }
  0xc4   :  { %v139_v35 = vpop.f32.mrf.mxu0 }
  0xc5   :  { %v171_v40 = vmax.f32 %v139_v35, 0.0 }
  0xcc   :  { %v142_v36 = vpop.f32.mrf.mxu0 }
  0xcd   :  { %v172_v39 = vmax.f32 %v142_v36, 0.0 }
  0xd4   :  { %v145_v37 = vpop.f32.mrf.mxu0 }
  0xd5   :  { %v173_v38 = vmax.f32 %v145_v37, 0.0 }
  0xd7   :  { %200 = vmatpush.msra.mxu1 %v173_v38  ;;  %339 = vmatpush.msra.mxu3 %v173_v38 }
  0xd9   :  { %201 = vmatpush.msra.mxu1 %v172_v39  ;;  %340 = vmatpush.msra.mxu3 %v172_v39 }
  0xdb   :  { %202 = vmatpush.msra.mxu1 %v171_v40  ;;  %341 = vmatpush.msra.mxu3 %v171_v40 }
  0xdd   :  { %203 = vmatpush.msra.mxu1 %v170_v41  ;;  %342 = vmatpush.msra.mxu3 %v170_v41 }
  0xdf   :  { %204 = vmatpush.msra.mxu1 %v169_v42  ;;  %343 = vmatpush.msra.mxu3 %v169_v42 }
  0xe1   :  { %205 = vmatpush.msra.mxu1 %v168_v43  ;;  %344 = vmatpush.msra.mxu3 %v168_v43 }
  0xe3   :  { %206 = vmatpush.msra.mxu1 %v167_v44  ;;  %345 = vmatpush.msra.mxu3 %v167_v44 }
  0xe5   :  { %207 = vmatpush.msra.mxu1 %v166_v45  ;;  %346 = vmatpush.msra.mxu3 %v166_v45 }
  0xe7   :  { %208 = vmatpush.msra.mxu1 %v165_v46  ;;  %347 = vmatpush.msra.mxu3 %v165_v46 }
  0xe9   :  { %209 = vmatpush.msra.mxu1 %v164_v47  ;;  %348 = vmatpush.msra.mxu3 %v164_v47 }
  0xeb   :  { %210 = vmatpush.msra.mxu1 %v163_v48  ;;  %349 = vmatpush.msra.mxu3 %v163_v48 }
  0xec   :  { %235 = vmatmul.f32.vlgmr.msra.gmra.mxu3 %v187_v49  ;;  %211 = vmatmul.f32.vlgmr.msra.gmra.mxu1 %v179_v50 }
  0xf4   :  { %238 = vmatmul.f32.gmra.mxu3 %v188_v51  ;;  %214 = vmatmul.f32.gmra.mxu1 %v180_v52 }
  0xfc   :  { %241 = vmatmul.f32.gmra.mxu3 %v189_v53  ;;  %217 = vmatmul.f32.gmra.mxu1 %v181_v54 }
 0x104   :  { %244 = vmatmul.f32.gmra.mxu3 %v190_v55  ;;  %220 = vmatmul.f32.gmra.mxu1 %v182_v56 }
 0x10c   :  { %247 = vmatmul.f32.gmra.mxu3 %v191_v57  ;;  %223 = vmatmul.f32.gmra.mxu1 %v183_v58 }
 0x114   :  { %250 = vmatmul.f32.gmra.mxu3 %v192_v59  ;;  %226 = vmatmul.f32.gmra.mxu1 %v184_v60 }
 0x11c   :  { %253 = vmatmul.f32.gmra.mxu3 %v193_v61  ;;  %229 = vmatmul.f32.gmra.mxu1 %v185_v62 }
 0x124   :  { %256 = vmatmul.f32.gmra.mxu3 %v194_v63  ;;  %232 = vmatmul.f32.gmra.mxu1 %v186_v0 }
 0x169   :  { %v212_v1 = vpop.f32.mrf.mxu1 }
 0x16a   :  { %v260_v32 = vmax.f32 %v212_v1, 0.0 }
 0x16f   :  { %v236_v2 = vpop.f32.mrf.mxu3 }
 0x170   :  { %v268_v24 = vmax.f32 %v236_v2, 0.0 }
 0x171   :  { %v215_v4 = vpop.f32.mrf.mxu1 }
 0x172   :  { %v261_v31 = vmax.f32 %v215_v4, 0.0 }
 0x177   :  { %v239_v3 = vpop.f32.mrf.mxu3 }
 0x178   :  { %v269_v23 = vmax.f32 %v239_v3, 0.0 }
 0x179   :  { %v218_v6 = vpop.f32.mrf.mxu1 }
 0x17a   :  { %v262_v30 = vmax.f32 %v218_v6, 0.0 }
 0x17f   :  { %v242_v5 = vpop.f32.mrf.mxu3 }
 0x180   :  { %v270_v21 = vmax.f32 %v242_v5, 0.0 }
 0x181   :  { %v221_v8 = vpop.f32.mrf.mxu1 }
 0x182   :  { %v263_v29 = vmax.f32 %v221_v8, 0.0 }
 0x187   :  { %v245_v7 = vpop.f32.mrf.mxu3 }
 0x188   :  { %v271_v20 = vmax.f32 %v245_v7, 0.0 }
 0x189   :  { %v224_v10 = vpop.f32.mrf.mxu1 }
 0x18a   :  { %v264_v28 = vmax.f32 %v224_v10, 0.0 }
 0x18f   :  { %v248_v9 = vpop.f32.mrf.mxu3 }
 0x190   :  { %v272_v19 = vmax.f32 %v248_v9, 0.0 }
 0x191   :  { %v227_v13 = vpop.f32.mrf.mxu1 }
 0x192   :  { %v265_v27 = vmax.f32 %v227_v13, 0.0 }
 0x197   :  { %v251_v11 = vpop.f32.mrf.mxu3 }
 0x198   :  { %v273_v18 = vmax.f32 %v251_v11, 0.0 }
 0x199   :  { %v230_v16 = vpop.f32.mrf.mxu1 }
 0x19a   :  { %v266_v26 = vmax.f32 %v230_v16, 0.0 }
 0x19f   :  { %v254_v12 = vpop.f32.mrf.mxu3 }
 0x1a0   :  { %v274_v17 = vmax.f32 %v254_v12, 0.0 }
 0x1a1   :  { %v233_v22 = vpop.f32.mrf.mxu1 }
 0x1a2   :  { %v267_v25 = vmax.f32 %v233_v22, 0.0 }
 0x1a7   :  { %v257_v14 = vpop.f32.mrf.mxu3 }
 0x1a8   :  { %v275_v15 = vmax.f32 %v257_v14, 0.0 }
 0x1aa   :  { %277 = vmatpush.msrb.mxu2 %v275_v15 }
 0x1ac   :  { %278 = vmatpush.msrb.mxu2 %v274_v17 }
 0x1ae   :  { %279 = vmatpush.msrb.mxu2 %v273_v18 }
 0x1b0   :  { %280 = vmatpush.msrb.mxu2 %v272_v19 }
 0x1b2   :  { %281 = vmatpush.msrb.mxu2 %v271_v20 }
 0x1b4   :  { %282 = vmatpush.msrb.mxu2 %v270_v21 }
 0x1b6   :  { %283 = vmatpush.msrb.mxu2 %v269_v23 }
 0x1b8   :  { %284 = vmatpush.msrb.mxu2 %v268_v24 }
 0x1ba   :  { %285 = vmatpush.msrb.mxu2 %v267_v25 }
 0x1bc   :  { %286 = vmatpush.msrb.mxu2 %v266_v26 }
 0x1be   :  { %287 = vmatpush.msrb.mxu2 %v265_v27 }
 0x1c0   :  { %288 = vmatpush.msrb.mxu2 %v264_v28 }
 0x1c2   :  { %289 = vmatpush.msrb.mxu2 %v263_v29 }
 0x1c4   :  { %290 = vmatpush.msrb.mxu2 %v262_v30 }
 0x1c6   :  { %291 = vmatpush.msrb.mxu2 %v261_v31 }
 0x1c8   :  { %292 = vmatpush.msrb.mxu2 %v260_v32 }
 0x1c9   :  { %293 = vmatmul.f32.vlgmr.msrb.gmra.mxu2 %v276_v33 }
 0x24c   :  { %v294_v34 = vpop.f32.mrf.mxu2 }
 0x24d   :  { %352 = vtanh.f32 %v294_v34 }
 0x253   :  { %v353_v35 = vpop.eup %352 }
 0x254   :  { %v298_v36 = vmul.f32 2.0, %v353_v35 }
 0x256   :  { %299 = vst [vmem:[#allocation5] sm:$0x1] %v298_v36 }
 0x257   :  { %310 = dma.vmem_to_hbm [thread:$0]  %s306_s27, 16, %s308_s29, [#allocation4]  }
 0x258   :  { %404 = dma.done.wait [#allocation4], 16  }
 0x259   :  { %405 = vsyncadd [#allocation4], 4294967280 }
 0x25a   :  { %315 = vsyncpa [#allocation3], 1 }
 0x25b   :  { %316 = vsyncpa [#allocation4], 1 }

</bundles_post_ra>
